<compile_context>
chip_gen: v7x
topology: tpu7x:2x2x1
jax: 0.10.0
libtpu: 0.0.40
codegen_flags: <defaults>
</compile_context>

<pallas_src>
import jax
import jax.numpy as jnp
from jax.experimental import pallas as pl
from jax.experimental.pallas import tpu as pltpu


# ----------------------------------------------------------------------------
# Kernel body: one fused elementwise pass (reciprocal + mul + log).
# ----------------------------------------------------------------------------
def _isigmoid_kernel(x_ref, o_ref):
    # Internal compute in f32 (v5e has no bf16 VPU/EUP path; f32 also keeps
    # precision near x -> 0 / 1).  Bytes moved from HBM are unchanged, so this
    # is free under the HBM roofline.
    x = x_ref[...].astype(jnp.float32)
    # logit(x) = log(x * 1/(1-x)): reciprocal + log both map to the EUP slot,
    # sub + mul to the VPU.
    y = jnp.log(x * pl.reciprocal(1.0 - x, approx=False))
    o_ref[...] = y.astype(o_ref.dtype)


# ----------------------------------------------------------------------------
# Wrapper: lane-dense layout + small/tiled path selection.
# ----------------------------------------------------------------------------
_LANES = 128
_SUBLANE_PAD = 8 * _LANES          # pad flat length to a multiple of 1024
_TILE_ROWS = 4096                  # 4096 x 128 x 4B = 2 MiB per f32 block
_SMALL_BYTES = 1 << 20             # below ~1 MiB: single ungridded call


@jax.jit
def isigmoid(x):
    """Elementwise log(x / (1 - x)) for any shape/dtype via Pallas."""
    orig_shape = x.shape
    total = x.size

    # --- lane-dense layout: flatten, pad to a multiple of (8 x 128) ---------
    flat = x.reshape(-1)
    pad = (-total) % _SUBLANE_PAD
    if pad:
        # Pad with 0.5 (finite logit) purely for hygiene; padded rows are
        # sliced off before returning.
        flat = jnp.concatenate(
            [flat, jnp.full((pad,), 0.5, dtype=x.dtype)])
    rows = flat.size // _LANES
    x2 = flat.reshape(rows, _LANES)

    nbytes = x2.size * x2.dtype.itemsize

    if nbytes < _SMALL_BYTES:
        # Tiny activation: a grid / pipeline is pure overhead.  Single
        # ungridded call, whole slab resident in VMEM.
        vmem = pl.BlockSpec(memory_space=pltpu.MemorySpace.VMEM)
        out2 = pl.pallas_call(
            _isigmoid_kernel,
            out_shape=jax.ShapeDtypeStruct(x2.shape, x.dtype),
            in_specs=[vmem],
            out_specs=vmem,
        )(x2)
    else:
        # Tiled, auto-pipelined path.  2 MiB blocks (input + output, double
        # buffered => 8 MiB resident) fit every chip's default scoped VMEM;
        # the single grid axis is "parallel" so v7x shards it across both
        # TensorCores (harmless on single-TC v5e/v6e).
        grid = (pl.cdiv(rows, _TILE_ROWS),)
        spec = pl.BlockSpec((_TILE_ROWS, _LANES), lambda i: (i, 0))
        out2 = pl.pallas_call(
            _isigmoid_kernel,
            out_shape=jax.ShapeDtypeStruct(x2.shape, x.dtype),
            grid=grid,
            in_specs=[spec],
            out_specs=spec,
            compiler_params=pltpu.CompilerParams(
                dimension_semantics=("parallel",)),
        )(x2)

    out_flat = out2.reshape(-1)
    if pad:
        out_flat = out_flat[:total]
    return out_flat.reshape(orig_shape)


def _reference(x):
    return jnp.log(x.astype(jnp.float32) / (1.0 - x.astype(jnp.float32))).astype(x.dtype)


if __name__ == "__main__":
    key = jax.random.PRNGKey(0)

    # 1) Shape consistent with an elementwise activation inside an autoencoder.
    N, C, H, W = 2, 4, 16, 16
    k1, k2 = jax.random.split(key)
    x = jax.random.uniform(k1, (N, C, H, W), dtype=jnp.float32,
                           minval=0.05, maxval=0.95)
    out = jax.block_until_ready(isigmoid(x))
    ref = _reference(x)
    assert out.shape == (N, C, H, W)
    assert jnp.all(jnp.isfinite(out)), "non-finite output"
    assert jnp.allclose(out, ref, atol=1e-5, rtol=1e-5), "mismatch vs JAX reference"

    # 2) Ragged size (not a multiple of 128) to exercise the pad/slice path.
    x_r = jax.random.uniform(k2, (3, 5, 37), dtype=jnp.float32,
                             minval=0.05, maxval=0.95)
    out_r = jax.block_until_ready(isigmoid(x_r))
    ref_r = _reference(x_r)
    assert out_r.shape == x_r.shape
    assert jnp.all(jnp.isfinite(out_r)), "non-finite output (ragged)"
    assert jnp.allclose(out_r, ref_r, atol=1e-5, rtol=1e-5), "mismatch (ragged)"

    print("KERNEL_OK")
</pallas_src>

<mosaic_0001>
module attributes {stable_mosaic.version = 11 : i64} {
  func.func @_isigmoid_kernel(%arg0: memref<16x128xf32, #tpu.memory_space<vmem>>, %arg1: memref<16x128xf32, #tpu.memory_space<vmem>>) attributes {dimension_semantics = [], scalar_prefetch = 0 : i64, scratch_operands = 0 : i64, tpu.core_type = #tpu.core_type<tc>} {
    %c0 = arith.constant 0 : index
    %c0_0 = arith.constant 0 : index
    %0 = vector.load %arg0[%c0, %c0_0] : memref<16x128xf32, #tpu.memory_space<vmem>>, vector<16x128xf32>
    %cst = arith.constant 1.000000e+00 : f32
    %1 = vector.broadcast %cst : f32 to vector<16x128xf32>
    %2 = arith.subf %1, %0 : vector<16x128xf32>
    %3 = tpu.reciprocal %2 : vector<16x128xf32> -> vector<16x128xf32>
    %4 = arith.mulf %0, %3 : vector<16x128xf32>
    %5 = math.log %4 : vector<16x128xf32>
    %c0_1 = arith.constant 0 : index
    %c0_2 = arith.constant 0 : index
    %6 = vector.load %arg1[%c0_1, %c0_2] : memref<16x128xf32, #tpu.memory_space<vmem>>, vector<16x128xf32>
    tpu.vector_store %arg1[%c0_1, %c0_2], %5 {strides = array<i32>} : memref<16x128xf32, #tpu.memory_space<vmem>>, vector<16x128xf32>,
    return
  }
}

</mosaic_0001>

<bundles_post_ra>
// kernel: isigmoid.1
= control target key start
LH: loop header
LB: loop body
LE: loop exit
PB: predicated region body
PF: predicated region fallthrough
CT: control target
= control target key end

     0   :  { %s56_s0 = inlined_call_operand.vmem [shape: f32[16,128], index: 0, kind: input, shape index: {}]   ;;  %s57_s1 = inlined_call_operand.vmem [shape: f32[16,128], index: 1, kind: output, shape index: {}]  }
   0x1   :  { %v8_v0 = vld [vmem:[%s56_s0] sm:$0xff]  ;;  %v9_v1 = vld [vmem:[%s56_s0 + $0x8] sm:$0xff] }
   0x2   :  { %v10_v2 = vsub.f32 1.0, %v8_v0  ;;  %v11_v3 = vsub.f32 1.0, %v9_v1 }
   0x4   :  { %26 = vrcp.f32 %v10_v2 }
   0x5   :  { %28 = vrcp.f32 %v11_v3 }
   0xe   :  { %v27_v4 = vpop.eup %26 }
   0xf   :  { %v29_v5 = vpop.eup %28  ;;  %v14_v6 = vmul.f32 %v27_v4, %v8_v0 }
  0x10   :  { %v15_v7 = vmul.f32 %v29_v5, %v9_v1 }
  0x11   :  { %30 = vlog2.f32 %v14_v6 }
  0x12   :  { %32 = vlog2.f32 %v15_v7 }
  0x1b   :  { %v31_v8 = vpop.eup %30 }
  0x1c   :  { %v33_v9 = vpop.eup %32  ;;  %v17_v10 = vmul.f32 0.6931472, %v31_v8 }
  0x1d   :  { %v19_v11 = vmul.f32 0.6931472, %v33_v9 }
  0x1e   :  { %20 = vst [vmem:[%s57_s1] sm:$0xff] %v17_v10 }
  0x1f   :  { %21 = vst [vmem:[%s57_s1 + $0x8] sm:$0xff] %v19_v11 }

</bundles_post_ra>
